<compile_context>
chip_gen: v6e
topology: v6e:2x2x1
jax: 0.10.0
libtpu: 0.0.40
codegen_flags: <defaults>
</compile_context>

<pallas_src>
import jax
import jax.numpy as jnp
from jax.experimental import pallas as pl
from jax.experimental.pallas import tpu as pltpu


def self_att_kernel(x_ref, w_ref, mask_ref, out_ref):
    # x_ref:    (TB, N, H)   tile of x (native dtype)
    # w_ref:    (1, 1, H)    linear weight (shared across grid steps)
    # mask_ref: (TB, N, 1)   additive mask: 0.0 (keep) or -1e9 (masked)
    # out_ref:  (TB, H)      pooled output tile
    x = x_ref[...].astype(jnp.float32)                        # (TB, N, H)
    w = w_ref[...]                                            # (1, 1, H)
    mask_add = mask_ref[...]                                  # (TB, N, 1)

    # Per-token scores; N stays on the sublane axis (only a lane reduce over H).
    # TODO(synk): if a v7x bundle profile shows this lane-reduce saturating the
    # XLU, move the score contraction onto the otherwise-idle MXU as a
    # (TB*N, H) @ (H, 1) matmul.
    att = jnp.sum(x * w, axis=-1, keepdims=True) + mask_add   # (TB, N, 1)

    # Row softmax over N (sublane axis); normalization deferred to the output.
    m = jnp.max(att, axis=1, keepdims=True)                   # (TB, 1, 1)
    p = jnp.exp(att - m)                                      # (TB, N, 1)
    s = jnp.sum(p, axis=1)                                    # (TB, 1)

    # Weighted sum over N on the VPU: lane-broadcast of p + sublane reduce.
    unnorm = jnp.sum(x * p, axis=1)                           # (TB, H)
    out_ref[...] = (unnorm / s).astype(out_ref.dtype)


def _round_up(x, m):
    return ((x + m - 1) // m) * m


def _pick_block_b(B, N, H, itemsize, *, vmem_budget_bytes=20 * 1024 * 1024):
    """Batch-tile size with padding-aware VMEM accounting.

    Counts lane/sublane padding (H -> 128 lanes, N -> 8 sublanes), 2x
    double-buffering of the DMA'd blocks and ~3 x-sized f32 in-kernel
    temporaries.  The total stays under `vmem_budget_bytes`, which itself sits
    below the explicit 32 MiB vmem_limit_bytes (safe on v5e/v6e/v7x).
    """
    n_pad = _round_up(N, 8)
    h_pad = _round_up(H, 128)
    x_row_in = n_pad * h_pad * itemsize        # DMA'd x block, per batch row
    x_row_f32 = n_pad * h_pad * 4              # in-kernel f32 temporaries
    mask_row = n_pad * 128 * 4                 # (N, 1) pads to (n_pad, 128)
    out_row = h_pad * 4
    per_row = 2 * x_row_in + 3 * x_row_f32 + 2 * mask_row + 2 * out_row
    tb = max(1, vmem_budget_bytes // per_row)

    # v7x has 2 TensorCores; with dimension_semantics=("parallel",) the batch
    # grid is sharded across them, so keep >= 2 grid steps when B allows it.
    if B > 8:
        tb = min(tb, _round_up(pl.cdiv(B, 2), 8))

    if tb >= B:
        return B                                # whole batch in a single block
    # Partial-batch blocks: the (TB, H) output block's sublane dim must be a
    # multiple of 8 (or equal to B, handled above).
    tb = max(8, (tb // 8) * 8)
    return min(tb, B)


def self_att(x, txt_mask, weight, bias=None, *, block_b=None):
    """
    x:        (B, N, H) float32 (or bf16)
    txt_mask: (B, 1, 1, N) bool   (True == masked, as in PyTorch masked_fill)
    weight:   (H,) or (1, H) float32  (nn.Linear(H, 1).weight)
    bias:     scalar (unused: a constant score shift cancels in the softmax)
    returns:  (B, H) in x.dtype
    """
    del bias  # cancels in the softmax
    B, N, H = x.shape
    w = jnp.asarray(weight, jnp.float32).reshape(1, 1, H)
    # Additive mask: 0.0 for kept tokens, -1e9 for masked ones.
    mask_add = jnp.where(txt_mask.reshape(B, N, 1),
                         jnp.float32(-1.0e9), jnp.float32(0.0))

    if block_b is None:
        block_b = _pick_block_b(B, N, H, jnp.dtype(x.dtype).itemsize)
    block_b = min(block_b, B)
    grid_b = pl.cdiv(B, block_b)

    return pl.pallas_call(
        self_att_kernel,
        out_shape=jax.ShapeDtypeStruct((B, H), x.dtype),
        grid_spec=pltpu.PrefetchScalarGridSpec(
            num_scalar_prefetch=0,
            grid=(grid_b,),
            in_specs=[
                # x tile.  (If a v7x profile shows DMA gaps at step
                # boundaries, add pipeline_mode=pl.Buffered(3) here.)
                pl.BlockSpec((block_b, N, H), lambda i: (i, 0, 0)),
                pl.BlockSpec((1, 1, H), lambda i: (0, 0, 0)),     # weight
                pl.BlockSpec((block_b, N, 1), lambda i: (i, 0, 0)),  # mask
            ],
            out_specs=pl.BlockSpec((block_b, H), lambda i: (i, 0)),
        ),
        compiler_params=pltpu.CompilerParams(
            dimension_semantics=("parallel",),
            vmem_limit_bytes=32 * 1024 * 1024,
        ),
    )(x, w, mask_add)


def self_att_reference(x, txt_mask, weight, bias):
    """Pure-JAX reference reproducing the PyTorch forward exactly."""
    B, N, H = x.shape
    mask = txt_mask.reshape(B, N)                       # squeeze(2).squeeze(1)
    att = (x @ weight.reshape(H, 1)).reshape(B, N) + bias
    att = jnp.where(mask, -1.0e9, att)
    att = jax.nn.softmax(att, axis=1).reshape(B, N, 1)
    return jnp.sum(x * att, axis=1)                     # (B, H)


if __name__ == "__main__":
    key = jax.random.PRNGKey(0)
    B, N, H = 2, 8, 32                      # batch, seq, GRU_hidden

    kx, km, kw, kb = jax.random.split(key, 4)
    x = jax.random.normal(kx, (B, N, H), dtype=jnp.float32)
    # Boolean mask (True == masked), shaped like PyTorch (B, 1, 1, N).
    txt_mask = (jax.random.uniform(km, (B, 1, 1, N)) > 0.7)
    # Make sure no row is fully masked.
    txt_mask = txt_mask.at[:, :, :, 0].set(False)

    # Deterministic nn.Linear(H, 1) parameters (uniform(-1/sqrt(H), 1/sqrt(H))).
    bound = 1.0 / jnp.sqrt(jnp.float32(H))
    weight = jax.random.uniform(kw, (H,), minval=-bound, maxval=bound,
                                dtype=jnp.float32)
    bias = jax.random.uniform(kb, (), minval=-bound, maxval=bound,
                              dtype=jnp.float32)

    out = self_att(x, txt_mask, weight, bias)
    out = jax.block_until_ready(out)

    ref = self_att_reference(x, txt_mask, weight, bias)
    assert out.shape == (B, H)
    assert jnp.allclose(out, ref, atol=1e-4, rtol=1e-4), "mismatch vs reference"

    print("KERNEL_OK")
</pallas_src>

<mosaic_0001>
module attributes {stable_mosaic.version = 11 : i64} {
  func.func @self_att_kernel(%arg0: i32, %arg1: memref<2x8x32xf32, #tpu.memory_space<vmem>>, %arg2: memref<1x1x32xf32, #tpu.memory_space<vmem>>, %arg3: memref<2x8x1xf32, #tpu.memory_space<vmem>>, %arg4: memref<2x32xf32, #tpu.memory_space<vmem>>) attributes {dimension_semantics = [#tpu.dimension_semantics<parallel>], iteration_bounds = array<i64: 1>, scalar_prefetch = 0 : i64, scratch_operands = 0 : i64, tpu.core_type = #tpu.core_type<tc>, window_params = [{transform_indices = @transform_0, window_bounds = array<i64: 2, 8, 32>}, {pipeline_mode = #tpu.pipeline_mode<synchronous>, transform_indices = @transform_1, window_bounds = array<i64: 1, 1, 32>}, {transform_indices = @transform_2, window_bounds = array<i64: 2, 8, 1>}, {transform_indices = @transform_3, window_bounds = array<i64: 2, 32>}]} {
    %c0 = arith.constant 0 : index
    %c0_0 = arith.constant 0 : index
    %c0_1 = arith.constant 0 : index
    %0 = vector.load %arg1[%c0, %c0_0, %c0_1] : memref<2x8x32xf32, #tpu.memory_space<vmem>>, vector<2x8x32xf32>
    %c0_2 = arith.constant 0 : index
    %c0_3 = arith.constant 0 : index
    %c0_4 = arith.constant 0 : index
    %1 = vector.load %arg2[%c0_2, %c0_3, %c0_4] : memref<1x1x32xf32, #tpu.memory_space<vmem>>, vector<1x1x32xf32>
    %c0_5 = arith.constant 0 : index
    %c0_6 = arith.constant 0 : index
    %c0_7 = arith.constant 0 : index
    %2 = vector.load %arg3[%c0_5, %c0_6, %c0_7] : memref<2x8x1xf32, #tpu.memory_space<vmem>>, vector<2x8x1xf32>
    %3 = vector.broadcast %1 : vector<1x1x32xf32> to vector<2x8x32xf32>
    %4 = arith.mulf %0, %3 : vector<2x8x32xf32>
    %cst = arith.constant dense<0.000000e+00> : vector<2x8xf32>
    %5 = vector.multi_reduction <add>, %4, %cst [2] : vector<2x8x32xf32> to vector<2x8xf32>
    %6 = vector.shape_cast %5 : vector<2x8xf32> to vector<2x8x1xf32>
    %7 = arith.addf %6, %2 : vector<2x8x1xf32>
    %cst_8 = arith.constant dense<0xFF800000> : vector<2x1xf32>
    %8 = vector.multi_reduction <maximumf>, %7, %cst_8 [1] : vector<2x8x1xf32> to vector<2x1xf32>
    %9 = vector.shape_cast %8 : vector<2x1xf32> to vector<2x1x1xf32>
    %10 = vector.broadcast %9 : vector<2x1x1xf32> to vector<2x8x1xf32>
    %11 = arith.subf %7, %10 : vector<2x8x1xf32>
    %12 = math.exp %11 : vector<2x8x1xf32>
    %cst_9 = arith.constant dense<0.000000e+00> : vector<2x1xf32>
    %13 = vector.multi_reduction <add>, %12, %cst_9 [1] : vector<2x8x1xf32> to vector<2x1xf32>
    %14 = vector.broadcast %12 : vector<2x8x1xf32> to vector<2x8x32xf32>
    %15 = arith.mulf %0, %14 : vector<2x8x32xf32>
    %cst_10 = arith.constant dense<0.000000e+00> : vector<2x32xf32>
    %16 = vector.multi_reduction <add>, %15, %cst_10 [1] : vector<2x8x32xf32> to vector<2x32xf32>
    %17 = vector.broadcast %13 : vector<2x1xf32> to vector<2x32xf32>
    %18 = arith.divf %16, %17 : vector<2x32xf32>
    %c0_11 = arith.constant 0 : index
    %c0_12 = arith.constant 0 : index
    %19 = vector.load %arg4[%c0_11, %c0_12] : memref<2x32xf32, #tpu.memory_space<vmem>>, vector<2x32xf32>
    tpu.vector_store %arg4[%c0_11, %c0_12], %18 {strides = array<i32>} : memref<2x32xf32, #tpu.memory_space<vmem>>, vector<2x32xf32>,
    return
  }
  func.func @transform_0(%arg0: i32) -> (i32, i32, i32) {
    %c0_i32 = arith.constant 0 : i32
    %c0_i32_0 = arith.constant 0 : i32
    %c0_i32_1 = arith.constant 0 : i32
    return %arg0, %c0_i32, %c0_i32_0 : i32, i32, i32
  }
  func.func @transform_1(%arg0: i32) -> (i32, i32, i32) {
    %c0_i32 = arith.constant 0 : i32
    %c0_i32_0 = arith.constant 0 : i32
    %c0_i32_1 = arith.constant 0 : i32
    %c0_i32_2 = arith.constant 0 : i32
    return %c0_i32, %c0_i32_0, %c0_i32_1 : i32, i32, i32
  }
  func.func @transform_2(%arg0: i32) -> (i32, i32, i32) {
    %c0_i32 = arith.constant 0 : i32
    %c0_i32_0 = arith.constant 0 : i32
    %c0_i32_1 = arith.constant 0 : i32
    return %arg0, %c0_i32, %c0_i32_0 : i32, i32, i32
  }
  func.func @transform_3(%arg0: i32) -> (i32, i32) {
    %c0_i32 = arith.constant 0 : i32
    %c0_i32_0 = arith.constant 0 : i32
    return %arg0, %c0_i32 : i32, i32
  }
}

</mosaic_0001>

<bundles_post_ra>
// kernel: tpu_custom_call.1
= control target key start
LH: loop header
LB: loop body
LE: loop exit
PB: predicated region body
PF: predicated region fallthrough
CT: control target
= control target key end

     0   :  { %vm28_vm0 = vcmask 261120   ;;  %s216_s0 = inlined_call_operand.vmem [shape: f32[2,8,32], index: 0, kind: input, shape index: {}]   ;;  %s217_s1 = inlined_call_operand.vmem [shape: f32[1,1,32], index: 1, kind: input, shape index: {}]   ;;  %s218_s2 = inlined_call_operand.vmem [shape: f32[2,8,1], index: 2, kind: input, shape index: {}]   ;;  %s219_s3 = inlined_call_operand.hbm [shape: f32[2,32], index: 3, kind: output, shape index: {}]  }
   0x1   :  { %v15_v0 = vld [vmem:[%s216_s0] sm:$0xff]  ;;  %v16_v2 = vld [vmem:[%s216_s0 + $0x8] sm:$0xff] }
   0x2   :  { %v133_v1 = vld [vmem:[%s217_s1] ss:$0 sm:$0xff] }
   0x3   :  { %v26_v3 = vmul.f32 %v133_v1, %v15_v0  ;;  %v27_v4 = vmul.f32 %v133_v1, %v16_v2 }
   0x4   :  { %8 = vsyncpa [#allocation3], 0  ;;  %v168_v7 = vmov 0   ;;  %v18_v8 = vld [vmem:[%s218_s2] sm:$0xff]  ;;  %vm37_vm1 = vcmask 7168   ;;  %v19_v11 = vld [vmem:[%s218_s2 + $0x8] sm:$0xff] }
   0x5   :  { %v29_v5 = vsel %vm28_vm0, %v26_v3, 0.0  ;;  %v32_v6 = vsel %vm28_vm0, %v27_v4, 0.0  ;;  %136 = vset.pattern.permute.xlu1 %v168_v7  ;;  %137 = vset.pattern.permute.xlu0 %v168_v7  ;;  %s169_s2 = smov [#allocation2]   ;;  %vm114_vm2 = vcmask 1041409   ;;  %vm117_vm3 = vcmask 254976  }
   0x6   :  { %30 = vadd.xlane.f32.xlu0 %v29_v5  ;;  %s125_s20 = sshll.u32 %s169_s2, 4  ;;  %s126_s20 = int_to_ptr.vmem [resolvable:$true] %s125_s20 }
   0x7   :  { %s146_s21 = scalar_lea.vmem %s126_s20, 32  ;;  %p151_p1 = scmp.lt.s32.totalorder %s126_s20, %s126_s20 }
   0x8   :  { %p147_p0 = scmp.ne.s32.totalorder %s126_s20, %s146_s21  ;;  %p152_p2 = scmp.lt.s32.totalorder %s146_s21, %s146_s21 }
   0xa   :  { %33 = vadd.xlane.f32.xlu0 %v32_v6  ;;  %p153_p3 = por %p152_p2, %p151_p1 }
   0xc   :  { %p154_p4 = pnand %p153_p3, %p147_p0 }
  0x8f   :  { %v31_v9 = vpop.xlane.xlu0 %30 }
  0x90   :  { %v35_v10 = vadd.f32 %v31_v9, %v18_v8 }
  0x92   :  { %v38_v12 = vsel %vm37_vm1, %v35_v10, -inf }
  0x93   :  { %v39_v13 = vrot.slane %v38_v12, 4  ;;  %v34_v14 = vpop.xlane.xlu0 %33 }
  0x94   :  { %v36_v15 = vadd.f32 %v34_v14, %v19_v11 }
  0x95   :  { %v40_v16 = vmax.f32 %v38_v12, %v39_v13 }
  0x96   :  { %v45_v17 = vsel %vm37_vm1, %v36_v15, -inf }
  0x97   :  { %v41_v18 = vrot.slane %v40_v16, 2  ;;  %v46_v19 = vrot.slane %v45_v17, 4 }
  0x99   :  { %v42_v20 = vmax.f32 %v40_v16, %v41_v18  ;;  %v47_v21 = vmax.f32 %v45_v17, %v46_v19 }
  0x9b   :  { %v43_v22 = vrot.slane %v42_v20, 1  ;;  %v48_v23 = vrot.slane %v47_v21, 2 }
  0x9d   :  { %v44_v24 = vmax.f32 %v42_v20, %v43_v22  ;;  %v49_v25 = vmax.f32 %v47_v21, %v48_v23 }
  0x9f   :  { %v52_v26 = vsub.f32 %v35_v10, %v44_v24  ;;  %v50_v27 = vrot.slane %v49_v25, 1 }
  0xa1   :  { %v54_v28 = vmul.f32 1.442695, %v52_v26  ;;  %v51_v29 = vmax.f32 %v49_v25, %v50_v27 }
  0xa3   :  { %138 = vpow2.f32 %v54_v28  ;;  %v53_v30 = vsub.f32 %v36_v15, %v51_v29 }
  0xa5   :  { %v56_v31 = vmul.f32 1.442695, %v53_v30 }
  0xa7   :  { %140 = vpow2.f32 %v56_v31 }
  0xb0   :  { %v139_v32 = vpop.eup %138 }
  0xb1   :  { %74 = vperm.xlu1 %136, %v139_v32   ;;  %v58_v33 = vsel %vm37_vm1, %v139_v32, 0.0 }
  0xb2   :  { %v59_v34 = vrot.slane %v58_v33, 4 }
  0xb4   :  { %v141_v35 = vpop.eup %140  ;;  %v60_v36 = vadd.f32 %v59_v34, %v58_v33 }
  0xb5   :  { %79 = vperm.xlu1 %136, %v141_v35   ;;  %v65_v37 = vsel %vm37_vm1, %v141_v35, 0.0 }
  0xb6   :  { %v61_v38 = vrot.slane %v60_v36, 2  ;;  %v66_v39 = vrot.slane %v65_v37, 4 }
  0xb8   :  { %v62_v40 = vadd.f32 %v61_v38, %v60_v36  ;;  %v67_v41 = vadd.f32 %v66_v39, %v65_v37 }
  0xba   :  { %v63_v42 = vrot.slane %v62_v40, 1  ;;  %v68_v43 = vrot.slane %v67_v41, 2 }
  0xbc   :  { %v64_v44 = vadd.f32 %v63_v42, %v62_v40  ;;  %v69_v45 = vadd.f32 %v68_v43, %v67_v41 }
  0xbe   :  { %100 = vperm.xlu0 %137, %v64_v44   ;;  %v70_v46 = vrot.slane %v69_v45, 1 }
  0xc0   :  { %v71_v47 = vadd.f32 %v70_v46, %v69_v45 }
  0xc2   :  { %105 = vperm.xlu1 %136, %v71_v47  }
 0x12c   :  { %v75_v48 = vpop.permute.xlu1 %74 }
 0x12d   :  { %v82_v49 = vmul.f32 %v75_v48, %v15_v0 }
 0x12f   :  { %v84_v52 = vsel %vm28_vm0, %v82_v49, 0.0 }
 0x130   :  { %v80_v50 = vpop.permute.xlu1 %79  ;;  %v85_v54 = vrot.slane %v84_v52, 4 }
 0x131   :  { %v83_v51 = vmul.f32 %v80_v50, %v16_v2 }
 0x132   :  { %v86_v57 = vadd.f32 %v85_v54, %v84_v52 }
 0x133   :  { %v91_v53 = vsel %vm28_vm0, %v83_v51, 0.0 }
 0x134   :  { %v92_v55 = vrot.slane %v91_v53, 4  ;;  %v87_v60 = vrot.slane %v86_v57, 2 }
 0x136   :  { %v93_v58 = vadd.f32 %v92_v55, %v91_v53  ;;  %v88_v62 = vadd.f32 %v87_v60, %v86_v57 }
 0x138   :  { %v94_v61 = vrot.slane %v93_v58, 2  ;;  %v89_v1 = vrot.slane %v88_v62, 1 }
 0x139   :  { %v101_v56 = vpop.permute.xlu0 %100 }
 0x13a   :  { %142 = vrcp.f32 %v101_v56  ;;  %v95_v63 = vadd.f32 %v94_v61, %v93_v58  ;;  %v90_v2 = vadd.f32 %v89_v1, %v88_v62 }
 0x13c   :  { %v96_v0 = vrot.slane %v95_v63, 1 }
 0x13d   :  { %v106_v59 = vpop.permute.xlu1 %105 }
 0x13e   :  { %144 = vrcp.f32 %v106_v59  ;;  %v97_v4 = vadd.f32 %v96_v0, %v95_v63 }
 0x147   :  { %v143_v3 = vpop.eup %142 }
 0x148   :  { %v109_v6 = vmul.f32 %v143_v3, %v90_v2 }
 0x14b   :  { %v145_v5 = vpop.eup %144 }
 0x14c   :  { %v111_v7 = vmul.f32 %v145_v5, %v97_v4 }
 0x14e   :  { %v115_v8 = vsel %vm114_vm2, %v111_v7, %v109_v6 }
 0x14f   :  { %118 = vst.msk [vmem:[#allocation2] sm:$0x3] %vm117_vm3, %v115_v8 }
 0x150   :  { %157 = shalt.err (!%p154_p4)
}
 0x151   :  { %128 = dma.vmem_to_hbm [thread:$0]  %s126_s20, 32, %s219_s3, [#allocation3]  }
 0x152   :  { %166 = dma.done.wait [#allocation3], 32  }
 0x153   :  { %167 = vsyncadd [#allocation3], 4294967264 }
 0x154   :  { %132 = vsyncpa [#allocation3], 1 }

</bundles_post_ra>
